<compile_context>
chip_gen: v5e
topology: v5e:2x2
jax: 0.10.0
libtpu: 0.0.40
codegen_flags: <defaults>
</compile_context>

<pallas_src>
import functools

import jax
import jax.numpy as jnp
from jax.experimental import pallas as pl
from jax.experimental.pallas import tpu as pltpu


def _round_up(x: int, mult: int) -> int:
    return pl.cdiv(x, mult) * mult


def _k_tiling(h: int, max_tile_k: int):
    """Static K tiling: returns (tile_k, num_k_tiles, required_padded_h).

    required_padded_h == tile_k * num_k_tiles exactly, so the contraction dim never
    has ragged (garbage) blocks. When h fits in one block, no padding is needed at
    all (a full-extent block dim is always legal, 128-multiple or not).
    """
    if h <= max_tile_k:
        return h, 1, h
    assert max_tile_k % 128 == 0, "max_tile_k must be a multiple of 128"
    h128 = _round_up(h, 128)
    nk = pl.cdiv(h128, max_tile_k)
    tk = _round_up(pl.cdiv(h128, nk), 128)
    return tk, nk, tk * nk


def prepare_decoder_params(weight, bias, *, max_tile_k: int = 2048, dtype=None):
    """One-time (init-time) parameter prep: zero-pad the contraction dim of the
    weight if K tiling requires it, and optionally cast params (e.g. bfloat16 to
    halve the weight HBM stream on v6e/v7x). Keeps the per-forward path copy-free.
    """
    h = weight.shape[0]
    _, _, h_need = _k_tiling(h, max_tile_k)
    if h_need != h:
        weight = jnp.pad(weight, ((0, h_need - h), (0, 0)))
    if dtype is not None:
        weight = weight.astype(dtype)
        bias = bias.astype(dtype)
    return weight, bias


def _linear_kernel(x_ref, w_ref, b_ref, o_ref, acc_ref, *, precision):
    # x_ref: (TM, TK), w_ref: (TK, TN), b_ref: (1, TN), o_ref: (TM, TN)
    kk = pl.program_id(2)

    @pl.when(kk == 0)
    def _():
        acc_ref[...] = jnp.zeros_like(acc_ref)

    acc_ref[...] += jnp.dot(
        x_ref[...],
        w_ref[...],
        preferred_element_type=jnp.float32,
        precision=precision,
    )

    @pl.when(kk == pl.num_programs(2) - 1)
    def _():
        o_ref[...] = (acc_ref[...] + b_ref[...].astype(jnp.float32)).astype(o_ref.dtype)

    # TODO(synk): argmax-only predict() variant: keep a per-row running (max, index)
    # over V tiles in scratch and write only M x 2 values instead of full logits.


def _pallas_linear(x, weight, bias, out_dtype, *, tile_m, tile_n, max_tile_k,
                   vmem_limit_bytes):
    """out[M, V] = x[M, H] @ weight[H_pad, V] + bias[V] (weight pre-padded along H)."""
    m, h = x.shape
    h_pad, v = weight.shape

    tk, nk, h_need = _k_tiling(h, max_tile_k)
    if h_pad != h_need:
        raise ValueError(
            f"weight first dim ({h_pad}) does not match the K tiling derived from "
            f"hidden={h}, max_tile_k={max_tile_k} (expected {h_need}); run "
            f"prepare_decoder_params with the same max_tile_k."
        )
    if h_need != h:
        # Only the contraction dim ever needs call-time padding (zeros contribute
        # nothing); M / V raggedness is handled by dropped OOB output writes.
        x = jnp.pad(x, ((0, 0), (0, h_need - h)))

    # Full-extent blocks for small dims (always legal), aligned tiles otherwise.
    tm = m if m <= tile_m else tile_m          # tile_m is a multiple of 8
    tn = v if v <= tile_n else tile_n          # tile_n is a multiple of 128
    nm = pl.cdiv(m, tm)
    nv = pl.cdiv(v, tn)

    # Grid order: keep the operand that would be more expensive to re-stream
    # resident across the inner axis.
    #   weight-major (grid = (nv, nm, nk)): weight streamed once, x streamed nv x.
    #   x-major      (grid = (nm, nv, nk)): x streamed once, weight streamed nm x.
    extra_x_bytes = (nv - 1) * m * h_need * x.dtype.itemsize
    extra_w_bytes = (nm - 1) * v * h_need * weight.dtype.itemsize
    weight_major = extra_x_bytes <= extra_w_bytes

    if weight_major:
        grid = (nv, nm, nk)
        x_spec = pl.BlockSpec((tm, tk), lambda j, i, k: (i, k))
        w_spec = pl.BlockSpec((tk, tn), lambda j, i, k: (k, j))
        b_spec = pl.BlockSpec((1, tn), lambda j, i, k: (0, j))
        o_spec = pl.BlockSpec((tm, tn), lambda j, i, k: (i, j))
    else:
        grid = (nm, nv, nk)
        x_spec = pl.BlockSpec((tm, tk), lambda i, j, k: (i, k))
        w_spec = pl.BlockSpec((tk, tn), lambda i, j, k: (k, j))
        b_spec = pl.BlockSpec((1, tn), lambda i, j, k: (0, j))
        o_spec = pl.BlockSpec((tm, tn), lambda i, j, k: (i, j))

    # Full f32 MXU accuracy for f32 inputs; bf16 inputs use the native bf16 path.
    precision = (jax.lax.Precision.HIGHEST
                 if x.dtype == jnp.float32 and weight.dtype == jnp.float32
                 else jax.lax.Precision.DEFAULT)

    cost = pl.CostEstimate(
        flops=2 * m * h_need * v,
        transcendentals=0,
        bytes_accessed=(m * h_need * x.dtype.itemsize
                        + h_need * v * weight.dtype.itemsize
                        + v * bias.dtype.itemsize
                        + m * v * jnp.dtype(out_dtype).itemsize),
    )

    return pl.pallas_call(
        functools.partial(_linear_kernel, precision=precision),
        out_shape=jax.ShapeDtypeStruct((m, v), out_dtype),
        grid_spec=pltpu.PrefetchScalarGridSpec(
            num_scalar_prefetch=0,
            grid=grid,
            in_specs=[x_spec, w_spec, b_spec],
            out_specs=o_spec,
            scratch_shapes=[pltpu.VMEM((tm, tn), jnp.float32)],
        ),
        compiler_params=pltpu.CompilerParams(
            dimension_semantics=("parallel", "parallel", "arbitrary"),
            vmem_limit_bytes=vmem_limit_bytes,
        ),
        cost_estimate=cost,
    )(x, weight, bias.reshape(1, v))


@functools.partial(
    jax.jit,
    static_argnames=("tile_m", "tile_n", "max_tile_k", "force_pallas",
                     "vmem_limit_bytes"),
)
def simple_decoder_forward(
    variable_encoding,
    weight,
    bias,
    *,
    tile_m: int = 512,
    tile_n: int = 256,
    max_tile_k: int = 2048,
    force_pallas: bool = False,
    vmem_limit_bytes=None,
):
    """logits = variable_encoding @ weight + bias (torch nn.Linear forward).

    variable_encoding: [batch, num_vars, hidden]
    weight:            [hidden (possibly H-padded via prepare_decoder_params), vocab]
    bias:              [vocab]
    returns:           [batch, num_vars, vocab]
    """
    b, n, h = variable_encoding.shape
    v = weight.shape[1]
    m = b * n
    out_dtype = variable_encoding.dtype
    x = variable_encoding.reshape(m, h)

    # If the params were prepared in bf16, stream the activations in bf16 too
    # (f32 accumulation inside the kernel keeps numerics sane).
    if weight.dtype == jnp.bfloat16 and x.dtype != jnp.bfloat16:
        x = x.astype(jnp.bfloat16)

    # Launch + DMA-setup cost of a pallas_call dwarfs a few-vreg problem.
    if force_pallas or m * v >= 4 * 8 * 128:
        out = _pallas_linear(
            x, weight, bias, out_dtype,
            tile_m=tile_m, tile_n=tile_n, max_tile_k=max_tile_k,
            vmem_limit_bytes=vmem_limit_bytes,
        )
    else:
        out = (jnp.dot(x, weight[:h, :], preferred_element_type=jnp.float32,
                       precision=jax.lax.Precision.HIGHEST)
               + bias.astype(jnp.float32)).astype(out_dtype)

    return out.reshape(b, n, v)


if __name__ == "__main__":
    key = jax.random.PRNGKey(0)

    def reference(enc, w, b):
        return (jnp.einsum("bnh,hv->bnv", enc, w,
                           precision=jax.lax.Precision.HIGHEST) + b)

    # ---- Test A: module-default toy shapes (hidden_size=128, len(vocab.types)=64).
    batch, num_vars, hidden, vocab_size = 2, 8, 128, 64
    k_x, k_w, k_b = jax.random.split(key, 3)
    enc = jax.random.normal(k_x, (batch, num_vars, hidden), dtype=jnp.float32)
    w = jax.random.normal(k_w, (hidden, vocab_size), dtype=jnp.float32) * 0.02
    b = jax.random.normal(k_b, (vocab_size,), dtype=jnp.float32) * 0.01
    wp, bp = prepare_decoder_params(w, b)          # no-op padding at these shapes

    logits = simple_decoder_forward(enc, wp, bp, force_pallas=True)
    jax.block_until_ready(logits)
    ref = reference(enc, w, b)
    assert logits.shape == (batch, num_vars, vocab_size)
    assert jnp.allclose(logits, ref, atol=1e-5, rtol=1e-5)

    # Size-gated public path (falls back to plain XLA dot at this tiny size).
    logits_gated = simple_decoder_forward(enc, wp, bp)
    jax.block_until_ready(logits_gated)
    assert jnp.allclose(logits_gated, ref, atol=1e-5, rtol=1e-5)

    # ---- Test B: ragged M and V edges, multi-tile vocab (V >> M decoder-head case).
    b2, n2, h2, v2 = 3, 50, 128, 1000
    k_x2, k_w2, k_b2 = jax.random.split(jax.random.PRNGKey(1), 3)
    enc2 = jax.random.normal(k_x2, (b2, n2, h2), dtype=jnp.float32)
    w2 = jax.random.normal(k_w2, (h2, v2), dtype=jnp.float32) * 0.02
    bb2 = jax.random.normal(k_b2, (v2,), dtype=jnp.float32) * 0.01
    wp2, bp2 = prepare_decoder_params(w2, bb2)
    out2 = simple_decoder_forward(enc2, wp2, bp2)
    jax.block_until_ready(out2)
    assert out2.shape == (b2, n2, v2)
    assert jnp.allclose(out2, reference(enc2, w2, bb2), atol=1e-4, rtol=1e-4)

    # ---- Test C: K-tiled accumulator path + ragged M tile + x-resident grid order.
    b3, n3, h3, v3 = 8, 80, 384, 256
    k_x3, k_w3, k_b3 = jax.random.split(jax.random.PRNGKey(2), 3)
    enc3 = jax.random.normal(k_x3, (b3, n3, h3), dtype=jnp.float32)
    w3 = jax.random.normal(k_w3, (h3, v3), dtype=jnp.float32) * 0.02
    bb3 = jax.random.normal(k_b3, (v3,), dtype=jnp.float32) * 0.01
    wp3, bp3 = prepare_decoder_params(w3, bb3, max_tile_k=128)
    out3 = simple_decoder_forward(enc3, wp3, bp3, max_tile_k=128)
    jax.block_until_ready(out3)
    assert out3.shape == (b3, n3, v3)
    assert jnp.allclose(out3, reference(enc3, w3, bb3), atol=1e-4, rtol=1e-4)

    # TODO(synk): predict() (boolean target_mask gather + argmax) is data-dependent
    # indexing glue, left to plain JAX outside the kernel.

    print("KERNEL_OK")
</pallas_src>

<mosaic_0001>
module attributes {stable_mosaic.version = 11 : i64} {
  func.func @_linear_kernel(%arg0: i32, %arg1: i32, %arg2: i32, %arg3: memref<16x128xf32, #tpu.memory_space<vmem>>, %arg4: memref<128x64xf32, #tpu.memory_space<vmem>>, %arg5: memref<1x64xf32, #tpu.memory_space<vmem>>, %arg6: memref<16x64xf32, #tpu.memory_space<vmem>>, %arg7: memref<16x64xf32, #tpu.memory_space<vmem>>) attributes {dimension_semantics = [#tpu.dimension_semantics<parallel>, #tpu.dimension_semantics<parallel>, #tpu.dimension_semantics<arbitrary>], iteration_bounds = array<i64: 1, 1, 1>, scalar_prefetch = 0 : i64, scratch_operands = 1 : i64, tpu.core_type = #tpu.core_type<tc>, window_params = [{transform_indices = @transform_0, window_bounds = array<i64: 16, 128>}, {transform_indices = @transform_1, window_bounds = array<i64: 128, 64>}, {transform_indices = @transform_2, window_bounds = array<i64: 1, 64>}, {transform_indices = @transform_3, window_bounds = array<i64: 16, 64>}]} {
    %c0_i32 = arith.constant 0 : i32
    %0 = arith.cmpi eq, %arg2, %c0_i32 : i32
    %1 = arith.extui %0 : i1 to i32
    %c0_i32_0 = arith.constant 0 : i32
    %2 = arith.cmpi ne, %1, %c0_i32_0 : i32
    scf.if %2 {
      %cst_10 = arith.constant 0.000000e+00 : f32
      %12 = vector.broadcast %cst_10 : f32 to vector<16x64xf32>
      %c0_11 = arith.constant 0 : index
      %c0_12 = arith.constant 0 : index
      %13 = vector.load %arg7[%c0_11, %c0_12] : memref<16x64xf32, #tpu.memory_space<vmem>>, vector<16x64xf32>
      tpu.vector_store %arg7[%c0_11, %c0_12], %12 {strides = array<i32>} : memref<16x64xf32, #tpu.memory_space<vmem>>, vector<16x64xf32>,
    } else {
    }
    %c0 = arith.constant 0 : index
    %c0_1 = arith.constant 0 : index
    %3 = vector.load %arg7[%c0, %c0_1] : memref<16x64xf32, #tpu.memory_space<vmem>>, vector<16x64xf32>
    %c0_2 = arith.constant 0 : index
    %c0_3 = arith.constant 0 : index
    %4 = vector.load %arg3[%c0_2, %c0_3] : memref<16x128xf32, #tpu.memory_space<vmem>>, vector<16x128xf32>
    %c0_4 = arith.constant 0 : index
    %c0_5 = arith.constant 0 : index
    %5 = vector.load %arg4[%c0_4, %c0_5] : memref<128x64xf32, #tpu.memory_space<vmem>>, vector<128x64xf32>
    %cst = arith.constant dense<0.000000e+00> : vector<16x64xf32>
    %6 = tpu.matmul %4, %5, %cst {dimension_numbers = #tpu.dot_dimension_numbers<[1], [0], [0], [1], [0, 0, 1, 1], [], []>, precision = #tpu.contract_precision<fp32>} : vector<16x128xf32>, vector<128x64xf32>, vector<16x64xf32> -> vector<16x64xf32>
    %7 = arith.addf %3, %6 : vector<16x64xf32>
    %c0_6 = arith.constant 0 : index
    %c0_7 = arith.constant 0 : index
    %8 = vector.load %arg7[%c0_6, %c0_7] : memref<16x64xf32, #tpu.memory_space<vmem>>, vector<16x64xf32>
    tpu.vector_store %arg7[%c0_6, %c0_7], %7 {strides = array<i32>} : memref<16x64xf32, #tpu.memory_space<vmem>>, vector<16x64xf32>,
    %c0_i32_8 = arith.constant 0 : i32
    %9 = arith.cmpi eq, %arg2, %c0_i32_8 : i32
    %10 = arith.extui %9 : i1 to i32
    %c0_i32_9 = arith.constant 0 : i32
    %11 = arith.cmpi ne, %10, %c0_i32_9 : i32
    scf.if %11 {
      %c0_10 = arith.constant 0 : index
      %c0_11 = arith.constant 0 : index
      %12 = vector.load %arg7[%c0_10, %c0_11] : memref<16x64xf32, #tpu.memory_space<vmem>>, vector<16x64xf32>
      %c0_12 = arith.constant 0 : index
      %c0_13 = arith.constant 0 : index
      %13 = vector.load %arg5[%c0_12, %c0_13] : memref<1x64xf32, #tpu.memory_space<vmem>>, vector<1x64xf32>
      %14 = vector.broadcast %13 : vector<1x64xf32> to vector<16x64xf32>
      %15 = arith.addf %12, %14 : vector<16x64xf32>
      %c0_14 = arith.constant 0 : index
      %c0_15 = arith.constant 0 : index
      %16 = vector.load %arg6[%c0_14, %c0_15] : memref<16x64xf32, #tpu.memory_space<vmem>>, vector<16x64xf32>
      tpu.vector_store %arg6[%c0_14, %c0_15], %15 {strides = array<i32>} : memref<16x64xf32, #tpu.memory_space<vmem>>, vector<16x64xf32>,
    } else {
    }
    return
  }
  func.func @transform_0(%arg0: i32, %arg1: i32, %arg2: i32) -> (i32, i32) {
    %c0_i32 = arith.constant 0 : i32
    return %arg1, %arg2 : i32, i32
  }
  func.func @transform_1(%arg0: i32, %arg1: i32, %arg2: i32) -> (i32, i32) {
    %c0_i32 = arith.constant 0 : i32
    return %arg2, %arg0 : i32, i32
  }
  func.func @transform_2(%arg0: i32, %arg1: i32, %arg2: i32) -> (i32, i32) {
    %c0_i32 = arith.constant 0 : i32
    %c0_i32_0 = arith.constant 0 : i32
    return %c0_i32, %arg0 : i32, i32
  }
  func.func @transform_3(%arg0: i32, %arg1: i32, %arg2: i32) -> (i32, i32) {
    %c0_i32 = arith.constant 0 : i32
    return %arg1, %arg0 : i32, i32
  }
}

</mosaic_0001>

<bundles_post_ra>
// kernel: simple_decoder_forward.1
= control target key start
LH: loop header
LB: loop body
LE: loop exit
PB: predicated region body
PF: predicated region fallthrough
CT: control target
= control target key end

     0   :  { %s807_s0 = inlined_call_operand.vmem [shape: f32[16,128], index: 0, kind: input, shape index: {}]   ;;  %s808_s1 = inlined_call_operand.vmem [shape: f32[128,64], index: 1, kind: input, shape index: {}]   ;;  %s809_s2 = inlined_call_operand.vmem [shape: f32[1,64], index: 2, kind: input, shape index: {}]   ;;  %s810_s3 = inlined_call_operand.hbm [shape: f32[16,64], index: 3, kind: output, shape index: {}]  }
   0x1   :  { %v41_v0 = vld [vmem:[%s808_s1 + $0x78] sm:$0xff]  ;;  %v40_v1 = vld [vmem:[%s808_s1 + $0x70] sm:$0xff]  ;;  %v39_v2 = vld [vmem:[%s808_s1 + $0x68] sm:$0xff] }
   0x2   :  { %v546_v3 = vand.u32 4294901760, %v41_v0  ;;  %v548_v4 = vand.u32 4294901760, %v40_v1  ;;  %v550_v5 = vand.u32 4294901760, %v39_v2  ;;  %v38_v6 = vld [vmem:[%s808_s1 + $0x60] sm:$0xff]  ;;  %v37_v7 = vld [vmem:[%s808_s1 + $0x58] sm:$0xff]  ;;  %v36_v8 = vld [vmem:[%s808_s1 + $0x50] sm:$0xff] }
   0x3   :  { %v561_v9 = vand.u32 4294901760, %v38_v6  ;;  %v563_v10 = vand.u32 4294901760, %v37_v7  ;;  %v565_v11 = vand.u32 4294901760, %v36_v8  ;;  %v35_v12 = vld [vmem:[%s808_s1 + $0x48] sm:$0xff]  ;;  %v34_v13 = vld [vmem:[%s808_s1 + $0x40] sm:$0xff]  ;;  %v33_v18 = vld [vmem:[%s808_s1 + $0x38] sm:$0xff] }
   0x4   :  { %43 = vmatpush.msra.mxu0 %v546_v3  ;;  %v92_v14 = vsub.f32 %v41_v0, %v546_v3  ;;  %v98_v15 = vsub.f32 %v40_v1, %v548_v4  ;;  %256 = vmatpush.msra.mxu3 %v546_v3  ;;  %v104_v16 = vsub.f32 %v39_v2, %v550_v5  ;;  %v578_v17 = vand.u32 4294901760, %v35_v12  ;;  %v32_v26 = vld [vmem:[%s808_s1 + $0x30] sm:$0xff] }
   0x5   :  { %v110_v19 = vsub.f32 %v38_v6, %v561_v9  ;;  %v116_v20 = vsub.f32 %v37_v7, %v563_v10  ;;  %v585_v21 = vand.u32 4294901760, %v34_v13  ;;  %v122_v25 = vsub.f32 %v36_v8, %v565_v11 }
   0x6   :  { %45 = vmatpush.msra.mxu0 %v548_v4  ;;  %198 = vmatpush.msra.mxu2 %v92_v14  ;;  %v588_v22 = vand.u32 4294901760, %v92_v14  ;;  %v590_v23 = vand.u32 4294901760, %v98_v15  ;;  %v592_v24 = vand.u32 4294901760, %v104_v16 }
   0x7   :  { %8 = vsyncpa [#allocation4], 0  ;;  %258 = vmatpush.msra.mxu3 %v548_v4  ;;  %v599_v27 = vand.u32 4294901760, %v110_v19  ;;  %v128_v28 = vsub.f32 %v35_v12, %v578_v17  ;;  %v602_v29 = vand.u32 4294901760, %v33_v18  ;;  %v608_v33 = vand.u32 4294901760, %v116_v20  ;;  %v31_v36 = vld [vmem:[%s808_s1 + $0x28] sm:$0xff] }
   0x8   :  { %47 = vmatpush.msra.mxu0 %v550_v5  ;;  %201 = vmatpush.msra.mxu2 %v98_v15  ;;  %v94_v30 = vsub.f32 %v92_v14, %v588_v22  ;;  %v100_v31 = vsub.f32 %v98_v15, %v590_v23  ;;  %v106_v32 = vsub.f32 %v104_v16, %v592_v24  ;;  %v612_v35 = vand.u32 4294901760, %v32_v26  ;;  %v30_v42 = vld [vmem:[%s808_s1 + $0x20] sm:$0xff]  ;;  %v29_v48 = vld [vmem:[%s808_s1 + $0x18] sm:$0xff]  ;;  %v28_v54 = vld [vmem:[%s808_s1 + $0x10] sm:$0xff]  ;;  %s514_s21 = smov [#allocation3]   ;;  %s438_s25 = sshll.u32 %s810_s3, 4  ;;  %s439_s25 = int_to_ptr.hbm [resolvable:$true] %s438_s25 }
   0x9   :  { %260 = vmatpush.msra.mxu3 %v550_v5  ;;  %v134_v34 = vsub.f32 %v34_v13, %v585_v21  ;;  %v112_v39 = vsub.f32 %v110_v19, %v599_v27  ;;  %v619_v40 = vand.u32 4294901760, %v122_v25  ;;  %v622_v41 = vand.u32 4294901760, %v128_v28  ;;  %v27_v60 = vld [vmem:[%s808_s1 + $0x8] sm:$0xff]  ;;  %v26_v2 = vld [vmem:[%s808_s1] sm:$0xff]  ;;  %s436_s22 = sshll.u32 %s514_s21, 4  ;;  %s515_s26 = smov 128   ;;  %s437_s22 = int_to_ptr.vmem [resolvable:$true] %s436_s22 }
   0xa   :  { %49 = vmatpush.msra.mxu0 %v561_v9  ;;  %204 = vmatpush.msra.mxu2 %v104_v16  ;;  %v95_v37 = vand.u32 4294901760, %v94_v30  ;;  %v101_v38 = vand.u32 4294901760, %v100_v31  ;;  %v107_v43 = vand.u32 4294901760, %v106_v32  ;;  %v118_v44 = vsub.f32 %v116_v20, %v608_v33  ;;  %s516_s27 = smov 8  }
   0xb   :  { %262 = vmatpush.msra.mxu3 %v561_v9  ;;  %v140_v45 = vsub.f32 %v33_v18, %v602_v29  ;;  %v630_v46 = vand.u32 4294901760, %v31_v36  ;;  %v633_v47 = vand.u32 4294901760, %v134_v34  ;;  %v113_v49 = vand.u32 4294901760, %v112_v39 }
   0xc   :  { %51 = vmatpush.msra.mxu0 %v563_v10  ;;  %96 = vmatpush.msra.mxu1 %v95_v37  ;;  %v124_v50 = vsub.f32 %v122_v25, %v619_v40  ;;  %v146_v51 = vsub.f32 %v32_v26, %v612_v35  ;;  %v641_v52 = vand.u32 4294901760, %v30_v42  ;;  %v130_v53 = vsub.f32 %v128_v28, %v622_v41 }
   0xd   :  { %207 = vmatpush.msra.mxu2 %v110_v19  ;;  %264 = vmatpush.msra.mxu3 %v563_v10  ;;  %v119_v55 = vand.u32 4294901760, %v118_v44  ;;  %v152_v56 = vsub.f32 %v31_v36, %v630_v46  ;;  %v650_v57 = vand.u32 4294901760, %v29_v48  ;;  %v652_v58 = vand.u32 4294901760, %v140_v45 }
   0xe   :  { %53 = vmatpush.msra.mxu0 %v565_v11  ;;  %102 = vmatpush.msra.mxu1 %v101_v38  ;;  %v136_v59 = vsub.f32 %v134_v34, %v633_v47  ;;  %v125_v61 = vand.u32 4294901760, %v124_v50  ;;  %v158_v62 = vsub.f32 %v30_v42, %v641_v52  ;;  %v661_v63 = vand.u32 4294901760, %v28_v54  ;;  %v24_v38 = vld [vmem:[%s807_s0] sm:$0xff] }
   0xf   :  { %210 = vmatpush.msra.mxu2 %v116_v20  ;;  %266 = vmatpush.msra.mxu3 %v565_v11  ;;  %v663_v0 = vand.u32 4294901760, %v146_v51  ;;  %v131_v1 = vand.u32 4294901760, %v130_v53  ;;  %v142_v6 = vsub.f32 %v140_v45, %v652_v58  ;;  %v164_v7 = vsub.f32 %v29_v48, %v650_v57 }
  0x10   :  { %55 = vmatpush.msra.mxu0 %v578_v17  ;;  %108 = vmatpush.msra.mxu1 %v107_v43  ;;  %v672_v8 = vand.u32 4294901760, %v27_v60  ;;  %v674_v12 = vand.u32 4294901760, %v152_v56  ;;  %v137_v13 = vand.u32 4294901760, %v136_v59  ;;  %v170_v15 = vsub.f32 %v28_v54, %v661_v63 }
  0x11   :  { %213 = vmatpush.msra.mxu2 %v122_v25  ;;  %268 = vmatpush.msra.mxu3 %v578_v17  ;;  %v148_v14 = vsub.f32 %v146_v51, %v663_v0  ;;  %v680_v16 = vand.u32 4294901760, %v26_v2  ;;  %v682_v18 = vand.u32 4294901760, %v158_v62  ;;  %v143_v19 = vand.u32 4294901760, %v142_v6 }
  0x12   :  { %57 = vmatpush.msra.mxu0 %v585_v21  ;;  %114 = vmatpush.msra.mxu1 %v113_v49  ;;  %v154_v20 = vsub.f32 %v152_v56, %v674_v12  ;;  %v176_v25 = vsub.f32 %v27_v60, %v672_v8  ;;  %v688_v26 = vand.u32 4294901760, %v164_v7  ;;  %v694_v32 = vand.u32 4294901760, %v170_v15 }
  0x13   :  { %216 = vmatpush.msra.mxu2 %v128_v28  ;;  %270 = vmatpush.msra.mxu3 %v585_v21  ;;  %v149_v28 = vand.u32 4294901760, %v148_v14  ;;  %v160_v30 = vsub.f32 %v158_v62, %v682_v18  ;;  %v182_v31 = vsub.f32 %v26_v2, %v680_v16  ;;  %v710_v44 = vand.u32 4294901760, %v24_v38 }
  0x14   :  { %59 = vmatpush.msra.mxu0 %v602_v29  ;;  %120 = vmatpush.msra.mxu1 %v119_v55  ;;  %v166_v36 = vsub.f32 %v164_v7, %v688_v26  ;;  %v699_v37 = vand.u32 4294901760, %v176_v25  ;;  %v172_v42 = vsub.f32 %v170_v15, %v694_v32  ;;  %v25_v55 = vld [vmem:[%s807_s0 + $0x8] sm:$0xff]  ;;  %vm19_vm0 = vcmask 523264  }
  0x15   :  { %219 = vmatpush.msra.mxu2 %v134_v34  ;;  %272 = vmatpush.msra.mxu3 %v602_v29  ;;  %v155_v34 = vand.u32 4294901760, %v154_v20  ;;  %v161_v39 = vand.u32 4294901760, %v160_v30  ;;  %v707_v43 = vand.u32 4294901760, %v182_v31  ;;  %v730_v59 = vand.u32 4294901760, %v25_v55 }
  0x16   :  { %61 = vmatpush.msra.mxu0 %v612_v35  ;;  %126 = vmatpush.msra.mxu1 %v125_v61  ;;  %v178_v48 = vsub.f32 %v176_v25, %v699_v37  ;;  %v173_v49 = vand.u32 4294901760, %v172_v42 }
  0x17   :  { %222 = vmatpush.msra.mxu2 %v140_v45  ;;  %274 = vmatpush.msra.mxu3 %v612_v35  ;;  %v167_v45 = vand.u32 4294901760, %v166_v36  ;;  %v184_v50 = vsub.f32 %v182_v31, %v707_v43 }
  0x18   :  { %63 = vmatpush.msra.mxu0 %v630_v46  ;;  %132 = vmatpush.msra.mxu1 %v131_v1  ;;  %v179_v53 = vand.u32 4294901760, %v178_v48 }
  0x19   :  { %225 = vmatpush.msra.mxu2 %v146_v51  ;;  %276 = vmatpush.msra.mxu3 %v630_v46  ;;  %v75_v51 = vsub.f32 %v24_v38, %v710_v44  ;;  %v185_v54 = vand.u32 4294901760, %v184_v50 }
  0x1a   :  { %65 = vmatpush.msra.mxu0 %v641_v52  ;;  %138 = vmatpush.msra.mxu1 %v137_v13  ;;  %v486_v13 = vld [vmem:[%s809_s2] ss:$0 sm:$0xff] }
  0x1b   :  { %228 = vmatpush.msra.mxu2 %v152_v56  ;;  %278 = vmatpush.msra.mxu3 %v641_v52  ;;  %v76_v56 = vand.u32 4294901760, %v75_v51 }
  0x1c   :  { %67 = vmatpush.msra.mxu0 %v650_v57  ;;  %144 = vmatpush.msra.mxu1 %v143_v19 }
  0x1d   :  { %231 = vmatpush.msra.mxu2 %v158_v62  ;;  %280 = vmatpush.msra.mxu3 %v650_v57 }
  0x1e   :  { %69 = vmatpush.msra.mxu0 %v661_v63  ;;  %150 = vmatpush.msra.mxu1 %v149_v28 }
  0x1f   :  { %234 = vmatpush.msra.mxu2 %v164_v7  ;;  %282 = vmatpush.msra.mxu3 %v661_v63 }
  0x20   :  { %71 = vmatpush.msra.mxu0 %v672_v8  ;;  %156 = vmatpush.msra.mxu1 %v155_v34 }
  0x21   :  { %237 = vmatpush.msra.mxu2 %v170_v15  ;;  %284 = vmatpush.msra.mxu3 %v672_v8 }
  0x22   :  { %73 = vmatpush.msra.mxu0 %v680_v16  ;;  %162 = vmatpush.msra.mxu1 %v161_v39 }
  0x23   :  { %240 = vmatpush.msra.mxu2 %v176_v25  ;;  %286 = vmatpush.msra.mxu3 %v680_v16 }
  0x24   :  { %303 = vmatpush.msrb.mxu0 %v588_v22  ;;  %168 = vmatpush.msra.mxu1 %v167_v45 }
  0x25   :  { %243 = vmatpush.msra.mxu2 %v182_v31  ;;  %466 = vmatpush.msrb.mxu3 %v546_v3 }
  0x26   :  { %307 = vmatpush.msrb.mxu0 %v590_v23  ;;  %174 = vmatpush.msra.mxu1 %v173_v49 }
  0x27   :  { %450 = vmatpush.msrb.mxu2 %v588_v22  ;;  %467 = vmatpush.msrb.mxu3 %v548_v4  ;;  %v77_v22 = vsub.f32 %v75_v51, %v76_v56 }
  0x28   :  { %311 = vmatpush.msrb.mxu0 %v592_v24  ;;  %180 = vmatpush.msra.mxu1 %v179_v53 }
  0x29   :  { %451 = vmatpush.msrb.mxu2 %v590_v23  ;;  %468 = vmatpush.msrb.mxu3 %v550_v5  ;;  %v83_v23 = vsub.f32 %v25_v55, %v730_v59 }
  0x2a   :  { %315 = vmatpush.msrb.mxu0 %v599_v27  ;;  %186 = vmatpush.msra.mxu1 %v185_v54 }
  0x2b   :  { %452 = vmatpush.msrb.mxu2 %v592_v24  ;;  %469 = vmatpush.msrb.mxu3 %v561_v9 }
  0x2c   :  { %319 = vmatpush.msrb.mxu0 %v608_v33  ;;  %374 = vmatpush.msrb.mxu1 %v546_v3  ;;  %v78_v3 = vand.u32 4294901760, %v77_v22 }
  0x2d   :  { %453 = vmatpush.msrb.mxu2 %v599_v27  ;;  %470 = vmatpush.msrb.mxu3 %v563_v10 }
  0x2e   :  { %323 = vmatpush.msrb.mxu0 %v619_v40  ;;  %376 = vmatpush.msrb.mxu1 %v548_v4  ;;  %v84_v4 = vand.u32 4294901760, %v83_v23 }
  0x2f   :  { %454 = vmatpush.msrb.mxu2 %v608_v33  ;;  %471 = vmatpush.msrb.mxu3 %v565_v11 }
  0x30   :  { %327 = vmatpush.msrb.mxu0 %v622_v41  ;;  %378 = vmatpush.msrb.mxu1 %v550_v5  ;;  %v85_v5 = vsub.f32 %v83_v23, %v84_v4 }
  0x31   :  { %455 = vmatpush.msrb.mxu2 %v619_v40  ;;  %79 = vmatmul.f32.vlgmr.msra.gmra.mxu0 %v78_v3 }
  0x32   :  { %331 = vmatpush.msrb.mxu0 %v633_v47  ;;  %380 = vmatpush.msrb.mxu1 %v561_v9  ;;  %v86_v9 = vand.u32 4294901760, %v85_v5 }
  0x33   :  { %456 = vmatpush.msrb.mxu2 %v622_v41  ;;  %472 = vmatpush.msrb.mxu3 %v578_v17 }
  0x34   :  { %382 = vmatpush.msrb.mxu1 %v563_v10  ;;  %335 = vmatpush.msrb.mxu0 %v652_v58  ;;  %v513_v10 = vmov 0.0  }
  0x35   :  { %457 = vmatpush.msrb.mxu2 %v633_v47  ;;  %473 = vmatpush.msrb.mxu3 %v585_v21  ;;  %20 = vst.msk [vmem:[#allocation2] sm:$0xff] %vm19_vm0, %v513_v10 }
  0x36   :  { %246 = vmatmul.f32.vlgmr.msra.gmra.mxu2 %v75_v51  ;;  %339 = vmatpush.msrb.mxu0 %v663_v0  ;;  %21 = vst.msk [vmem:[#allocation2 + $0x8] sm:$0xff] %vm19_vm0, %v513_v10 }
  0x37   :  { %458 = vmatpush.msrb.mxu2 %v652_v58  ;;  %384 = vmatpush.msrb.mxu1 %v565_v11 }
  0x38   :  { %290 = vmatmul.f32.vlgmr.msra.gmra.mxu3 %v76_v56  ;;  %343 = vmatpush.msrb.mxu0 %v674_v12 }
  0x39   :  { %459 = vmatpush.msrb.mxu2 %v663_v0  ;;  %386 = vmatpush.msrb.mxu1 %v578_v17 }
  0x3a   :  { %474 = vmatpush.msrb.mxu3 %v602_v29  ;;  %188 = vmatmul.f32.vlgmr.msra.gmra.mxu1 %v710_v44 }
  0x3b   :  { %460 = vmatpush.msrb.mxu2 %v674_v12  ;;  %347 = vmatpush.msrb.mxu0 %v682_v18 }
  0x3c   :  { %388 = vmatpush.msrb.mxu1 %v585_v21  ;;  %475 = vmatpush.msrb.mxu3 %v612_v35  ;;  %v22_v62 = vld [vmem:[#allocation2] sm:$0xff] }
  0x3d   :  { %87 = vmatmul.f32.gmra.mxu0 %v86_v9  ;;  %461 = vmatpush.msrb.mxu2 %v682_v18  ;;  %v23_v2 = vld [vmem:[#allocation2 + $0x8] sm:$0xff] }
  0x3e   :  { %351 = vmatpush.msrb.mxu0 %v688_v26  ;;  %390 = vmatpush.msrb.mxu1 %v602_v29 }
  0x3f   :  { %476 = vmatpush.msrb.mxu3 %v630_v46  ;;  %251 = vmatmul.f32.gmra.mxu2 %v83_v23 }
  0x40   :  { %462 = vmatpush.msrb.mxu2 %v688_v26  ;;  %355 = vmatpush.msrb.mxu0 %v694_v32 }
  0x41   :  { %392 = vmatpush.msrb.mxu1 %v612_v35  ;;  %477 = vmatpush.msrb.mxu3 %v641_v52 }
  0x42   :  { %296 = vmatmul.f32.gmra.mxu3 %v84_v4  ;;  %463 = vmatpush.msrb.mxu2 %v694_v32 }
  0x43   :  { %359 = vmatpush.msrb.mxu0 %v699_v37  ;;  %394 = vmatpush.msrb.mxu1 %v630_v46 }
  0x44   :  { %478 = vmatpush.msrb.mxu3 %v650_v57  ;;  %192 = vmatmul.f32.gmra.mxu1 %v730_v59 }
  0x45   :  { %464 = vmatpush.msrb.mxu2 %v699_v37  ;;  %363 = vmatpush.msrb.mxu0 %v707_v43 }
  0x46   :  { %396 = vmatpush.msrb.mxu1 %v641_v52  ;;  %479 = vmatpush.msrb.mxu3 %v661_v63 }
  0x47   :  { %365 = vmatmul.f32.vlgmr.msrb.gmra.mxu0 %v710_v44  ;;  %465 = vmatpush.msrb.mxu2 %v707_v43 }
  0x48   :  { %398 = vmatpush.msrb.mxu1 %v650_v57  ;;  %480 = vmatpush.msrb.mxu3 %v672_v8 }
  0x49   :  { %369 = vmatmul.f32.vlgmr.msrb.gmra.mxu2 %v730_v59 }
  0x4a   :  { %400 = vmatpush.msrb.mxu1 %v661_v63  ;;  %481 = vmatpush.msrb.mxu3 %v680_v16 }
  0x4b   :  { %410 = vmatmul.f32.vlgmr.msrb.gmra.mxu3 %v730_v59 }
  0x4c   :  { %402 = vmatpush.msrb.mxu1 %v672_v8 }
  0x4e   :  { %404 = vmatpush.msrb.mxu1 %v680_v16 }
  0x4f   :  { %406 = vmatmul.f32.vlgmr.msrb.gmra.mxu1 %v710_v44 }
  0xae   :  { %v80_v11 = vpop.f32.mrf.mxu0 }
  0xb7   :  { %v189_v17 = vpop.f32.mrf.mxu1 }
  0xb8   :  { %v190_v29 = vadd.f32 %v189_v17, %v80_v11 }
  0xb9   :  { %v247_v21 = vpop.f32.mrf.mxu2 }
  0xba   :  { %v88_v27 = vpop.f32.mrf.mxu0  ;;  %v248_v41 = vadd.f32 %v247_v21, %v190_v29 }
  0xbb   :  { %v291_v24 = vpop.f32.mrf.mxu3 }
  0xbc   :  { %v292_v57 = vadd.f32 %v291_v24, %v248_v41 }
  0xc1   :  { %v193_v33 = vpop.f32.mrf.mxu1 }
  0xc2   :  { %v252_v35 = vpop.f32.mrf.mxu2  ;;  %v194_v40 = vadd.f32 %v193_v33, %v88_v27 }
  0xc4   :  { %v253_v47 = vadd.f32 %v252_v35, %v194_v40  ;;  %v366_v52 = vpop.f32.mrf.mxu0 }
  0xc5   :  { %v297_v46 = vpop.f32.mrf.mxu3  ;;  %v367_v58 = vadd.f32 %v366_v52, %v292_v57 }
  0xc6   :  { %v298_v60 = vadd.f32 %v297_v46, %v253_v47 }
  0xcc   :  { %v370_v61 = vpop.f32.mrf.mxu2  ;;  %v407_v63 = vpop.f32.mrf.mxu1 }
  0xcd   :  { %v371_v0 = vadd.f32 %v370_v61, %v298_v60  ;;  %v408_v1 = vadd.f32 %v407_v63, %v367_v58 }
  0xce   :  { %v411_v6 = vpop.f32.mrf.mxu3 }
  0xcf   :  { %v414_v7 = vadd.f32 %v408_v1, %v22_v62  ;;  %v412_v8 = vadd.f32 %v411_v6, %v371_v0 }
  0xd1   :  { %417 = vst.msk [vmem:[#allocation2] sm:$0xff] %vm19_vm0, %v414_v7  ;;  %v415_v12 = vadd.f32 %v412_v8, %v23_v2 }
  0xd3   :  { %418 = vst.msk [vmem:[#allocation2 + $0x8] sm:$0xff] %vm19_vm0, %v415_v12 }
  0xd8   :  { %v422_v14 = vld [vmem:[#allocation2] sm:$0xff] }
  0xd9   :  { %v428_v15 = vadd.f32 %v486_v13, %v422_v14 }
  0xda   :  { %v423_v16 = vld [vmem:[#allocation2 + $0x8] sm:$0xff] }
  0xdb   :  { %v429_v18 = vadd.f32 %v486_v13, %v423_v16  ;;  %430 = vst.msk [vmem:[#allocation3] sm:$0xff] %vm19_vm0, %v428_v15 }
  0xdd   :  { %431 = vst.msk [vmem:[#allocation3 + $0x8] sm:$0xff] %vm19_vm0, %v429_v18 }
  0xde   :  { %444 = dma.vmem_to_hbm [thread:$0]  %s437_s22, 256, %s439_s25, [#allocation4], %s515_s26, %s515_s26, %s516_s27  }
  0xdf   :  { %511 = dma.done.wait [#allocation4], 256  }
  0xe0   :  { %512 = vsyncadd [#allocation4], 4294967040 }
  0xe1   :  { %449 = vsyncpa [#allocation4], 1 }

</bundles_post_ra>
